<compile_context>
chip_gen: v6e
topology: v6e:2x2x1
jax: 0.10.0
libtpu: 0.0.40
codegen_flags: <defaults>
</compile_context>

<pallas_src>
import functools

import jax
import jax.numpy as jnp
import numpy as np
from jax.experimental import pallas as pl
from jax.experimental.pallas import tpu as pltpu

EPS = 1e-7  # cfg.NETWORK.EPS


def _kld_kernel(inp_ref, tgt_ref, out_ref, sum_p_ref, sum_q_ref, kl_ref, *, eps):
    """Two-phase, tiled, per-sample KL reduction.

    Refs:
      inp_ref/tgt_ref : (bn, tile_p) pixel tile of the flattened maps
      out_ref         : (bn, 1) per-sample KL (written on last tile of phase 1)
      sum_p/sum_q/kl  : (bn, 1) f32 VMEM accumulators (persist across grid)
    """
    phase = pl.program_id(1)
    tile = pl.program_id(2)
    last_tile = pl.num_programs(2) - 1

    # Re-initialize accumulators at the start of every batch block.
    @pl.when(jnp.logical_and(phase == 0, tile == 0))
    def _():
        sum_p_ref[...] = jnp.zeros_like(sum_p_ref)
        sum_q_ref[...] = jnp.zeros_like(sum_q_ref)
        kl_ref[...] = jnp.zeros_like(kl_ref)

    p = inp_ref[...].astype(jnp.float32)   # (bn, tile_p)
    q = tgt_ref[...].astype(jnp.float32)   # (bn, tile_p)

    # Phase 0: per-sample sums (f32 accumulation).
    @pl.when(phase == 0)
    def _():
        sum_p_ref[...] += jnp.sum(p, axis=1, keepdims=True)
        sum_q_ref[...] += jnp.sum(q, axis=1, keepdims=True)

    # Phase 1: per-sample KL, normalization fused into the KL expression so no
    # extra full-size normalized copies need to stay live.
    @pl.when(phase == 1)
    def _():
        inv_sp = 1.0 / (sum_p_ref[...] + eps)   # (bn, 1)
        inv_sq = 1.0 / (sum_q_ref[...] + eps)   # (bn, 1)
        pn = p * inv_sp
        qn = q * inv_sq
        kl = qn * jnp.log(qn / (pn + eps) + eps)
        kl_ref[...] += jnp.sum(kl, axis=1, keepdims=True)

    @pl.when(jnp.logical_and(phase == 1, tile == last_tile))
    def _():
        out_ref[...] = kl_ref[...]


def my_kld_loss(input_nchw, target_nchw, eps=EPS, max_tile_elems=512 * 1024):
    """KL-divergence loss between two NCHW saliency-map batches (scalar)."""
    assert input_nchw.shape == target_nchw.shape
    n = input_nchw.shape[0]
    p = int(np.prod(input_nchw.shape[1:]))

    x = input_nchw.reshape(n, p)
    t = target_nchw.reshape(n, p)

    # Batch blocking: lets the batch grid axis be "parallel" (2 TCs on v7x).
    bn = 8 if (n % 8 == 0) else n

    # Pixel tiling: lane-dense (multiple of 128), capped at max_tile_elems f32
    # per input tile (default 2 MiB) so 2 inputs x 2 pipeline buffers plus body
    # temporaries fit comfortably inside v7x's 64 MiB VMEM.
    tile_p = ((max_tile_elems // bn) // 128) * 128
    tile_p = max(128, tile_p)
    tile_p = min(tile_p, pl.cdiv(p, 128) * 128)

    p_pad = pl.cdiv(p, tile_p) * tile_p
    if p_pad != p:
        # Zero padding contributes 0 to the sums and 0*log(eps)=0 to the KL.
        x = jnp.pad(x, ((0, 0), (0, p_pad - p)))
        t = jnp.pad(t, ((0, 0), (0, p_pad - p)))
    num_tiles = p_pad // tile_p

    per_sample = pl.pallas_call(
        functools.partial(_kld_kernel, eps=eps),
        out_shape=jax.ShapeDtypeStruct((n, 1), jnp.float32),
        grid=(n // bn, 2, num_tiles),
        in_specs=[
            pl.BlockSpec((bn, tile_p), lambda b, ph, i: (b, i)),
            pl.BlockSpec((bn, tile_p), lambda b, ph, i: (b, i)),
        ],
        out_specs=pl.BlockSpec((bn, 1), lambda b, ph, i: (b, 0)),
        scratch_shapes=[
            pltpu.VMEM((bn, 1), jnp.float32),  # sum_p accumulator
            pltpu.VMEM((bn, 1), jnp.float32),  # sum_q accumulator
            pltpu.VMEM((bn, 1), jnp.float32),  # kl accumulator
        ],
        compiler_params=pltpu.CompilerParams(
            dimension_semantics=("parallel", "arbitrary", "arbitrary"),
            vmem_limit_bytes=48 * 1024 * 1024,
        ),
    )(x, t)
    # Batch mean in the wrapper (keeps the kernel a pure per-sample reduction).
    return jnp.mean(per_sample[:, 0])


def _reference(input_nchw, target_nchw, eps=EPS):
    n = input_nchw.shape[0]
    p = input_nchw.reshape(n, -1).astype(jnp.float32)
    q = target_nchw.reshape(n, -1).astype(jnp.float32)
    p = p / (jnp.sum(p, axis=1, keepdims=True) + eps)
    q = q / (jnp.sum(q, axis=1, keepdims=True) + eps)
    kl = q * jnp.log(q / (p + eps) + eps)
    return jnp.mean(jnp.sum(kl, axis=1))


if __name__ == "__main__":
    key = jax.random.PRNGKey(0)
    k1, k2 = jax.random.split(key)

    # Saliency maps: batch=2, channels=1, spatial=16x16, non-negative values.
    shape = (2, 1, 16, 16)
    inp = jax.nn.sigmoid(jax.random.normal(k1, shape, dtype=jnp.float32))
    tgt = jax.nn.sigmoid(jax.random.normal(k2, shape, dtype=jnp.float32))

    loss = my_kld_loss(inp, tgt)
    jax.block_until_ready(loss)
    ref = _reference(inp, tgt)
    np.testing.assert_allclose(np.asarray(loss), np.asarray(ref),
                               rtol=1e-5, atol=1e-6)

    # Exercise the multi-tile (pixel) and multi-batch-block grid paths with a
    # tiny tile cap so the accumulation logic is covered at small shapes.
    shape2 = (16, 1, 16, 16)
    k3, k4 = jax.random.split(k2)
    inp2 = jax.nn.sigmoid(jax.random.normal(k3, shape2, dtype=jnp.float32))
    tgt2 = jax.nn.sigmoid(jax.random.normal(k4, shape2, dtype=jnp.float32))
    loss2 = my_kld_loss(inp2, tgt2, max_tile_elems=1024)
    jax.block_until_ready(loss2)
    ref2 = _reference(inp2, tgt2)
    np.testing.assert_allclose(np.asarray(loss2), np.asarray(ref2),
                               rtol=1e-5, atol=1e-6)

    print("KERNEL_OK")
</pallas_src>

<mosaic_0001>
module attributes {stable_mosaic.version = 11 : i64} {
  func.func @_kld_kernel(%arg0: i32, %arg1: i32, %arg2: i32, %arg3: memref<2x256xf32, #tpu.memory_space<vmem>>, %arg4: memref<2x256xf32, #tpu.memory_space<vmem>>, %arg5: memref<2x1xf32, #tpu.memory_space<vmem>>, %arg6: memref<2x1xf32, #tpu.memory_space<vmem>>, %arg7: memref<2x1xf32, #tpu.memory_space<vmem>>, %arg8: memref<2x1xf32, #tpu.memory_space<vmem>>) attributes {dimension_semantics = [#tpu.dimension_semantics<parallel>, #tpu.dimension_semantics<arbitrary>, #tpu.dimension_semantics<arbitrary>], iteration_bounds = array<i64: 1, 2, 1>, scalar_prefetch = 0 : i64, scratch_operands = 3 : i64, tpu.core_type = #tpu.core_type<tc>, window_params = [{transform_indices = @transform_0, window_bounds = array<i64: 2, 256>}, {transform_indices = @transform_1, window_bounds = array<i64: 2, 256>}, {transform_indices = @transform_2, window_bounds = array<i64: 2, 1>}]} {
    %c0_i32 = arith.constant 0 : i32
    %0 = arith.cmpi eq, %arg1, %c0_i32 : i32
    %c0_i32_0 = arith.constant 0 : i32
    %1 = arith.cmpi eq, %arg2, %c0_i32_0 : i32
    %2 = arith.andi %0, %1 : i1
    %3 = arith.extui %2 : i1 to i32
    %c0_i32_1 = arith.constant 0 : i32
    %4 = arith.cmpi ne, %3, %c0_i32_1 : i32
    scf.if %4 {
      %cst = arith.constant 0.000000e+00 : f32
      %18 = vector.broadcast %cst : f32 to vector<2x1xf32>
      %c0_11 = arith.constant 0 : index
      %c0_12 = arith.constant 0 : index
      %19 = vector.load %arg6[%c0_11, %c0_12] : memref<2x1xf32, #tpu.memory_space<vmem>>, vector<2x1xf32>
      tpu.vector_store %arg6[%c0_11, %c0_12], %18 {strides = array<i32>} : memref<2x1xf32, #tpu.memory_space<vmem>>, vector<2x1xf32>,
      %cst_13 = arith.constant 0.000000e+00 : f32
      %20 = vector.broadcast %cst_13 : f32 to vector<2x1xf32>
      %c0_14 = arith.constant 0 : index
      %c0_15 = arith.constant 0 : index
      %21 = vector.load %arg7[%c0_14, %c0_15] : memref<2x1xf32, #tpu.memory_space<vmem>>, vector<2x1xf32>
      tpu.vector_store %arg7[%c0_14, %c0_15], %20 {strides = array<i32>} : memref<2x1xf32, #tpu.memory_space<vmem>>, vector<2x1xf32>,
      %cst_16 = arith.constant 0.000000e+00 : f32
      %22 = vector.broadcast %cst_16 : f32 to vector<2x1xf32>
      %c0_17 = arith.constant 0 : index
      %c0_18 = arith.constant 0 : index
      %23 = vector.load %arg8[%c0_17, %c0_18] : memref<2x1xf32, #tpu.memory_space<vmem>>, vector<2x1xf32>
      tpu.vector_store %arg8[%c0_17, %c0_18], %22 {strides = array<i32>} : memref<2x1xf32, #tpu.memory_space<vmem>>, vector<2x1xf32>,
    } else {
    }
    %c0 = arith.constant 0 : index
    %c0_2 = arith.constant 0 : index
    %5 = vector.load %arg3[%c0, %c0_2] : memref<2x256xf32, #tpu.memory_space<vmem>>, vector<2x256xf32>
    %c0_3 = arith.constant 0 : index
    %c0_4 = arith.constant 0 : index
    %6 = vector.load %arg4[%c0_3, %c0_4] : memref<2x256xf32, #tpu.memory_space<vmem>>, vector<2x256xf32>
    %c0_i32_5 = arith.constant 0 : i32
    %7 = arith.cmpi eq, %arg1, %c0_i32_5 : i32
    %8 = arith.extui %7 : i1 to i32
    %c0_i32_6 = arith.constant 0 : i32
    %9 = arith.cmpi ne, %8, %c0_i32_6 : i32
    scf.if %9 {
      %c0_11 = arith.constant 0 : index
      %c0_12 = arith.constant 0 : index
      %18 = vector.load %arg6[%c0_11, %c0_12] : memref<2x1xf32, #tpu.memory_space<vmem>>, vector<2x1xf32>
      %cst = arith.constant dense<0.000000e+00> : vector<2xf32>
      %19 = vector.multi_reduction <add>, %5, %cst [1] : vector<2x256xf32> to vector<2xf32>
      %20 = vector.shape_cast %19 : vector<2xf32> to vector<2x1xf32>
      %21 = arith.addf %18, %20 : vector<2x1xf32>
      %c0_13 = arith.constant 0 : index
      %c0_14 = arith.constant 0 : index
      %22 = vector.load %arg6[%c0_13, %c0_14] : memref<2x1xf32, #tpu.memory_space<vmem>>, vector<2x1xf32>
      tpu.vector_store %arg6[%c0_13, %c0_14], %21 {strides = array<i32>} : memref<2x1xf32, #tpu.memory_space<vmem>>, vector<2x1xf32>,
      %c0_15 = arith.constant 0 : index
      %c0_16 = arith.constant 0 : index
      %23 = vector.load %arg7[%c0_15, %c0_16] : memref<2x1xf32, #tpu.memory_space<vmem>>, vector<2x1xf32>
      %cst_17 = arith.constant dense<0.000000e+00> : vector<2xf32>
      %24 = vector.multi_reduction <add>, %6, %cst_17 [1] : vector<2x256xf32> to vector<2xf32>
      %25 = vector.shape_cast %24 : vector<2xf32> to vector<2x1xf32>
      %26 = arith.addf %23, %25 : vector<2x1xf32>
      %c0_18 = arith.constant 0 : index
      %c0_19 = arith.constant 0 : index
      %27 = vector.load %arg7[%c0_18, %c0_19] : memref<2x1xf32, #tpu.memory_space<vmem>>, vector<2x1xf32>
      tpu.vector_store %arg7[%c0_18, %c0_19], %26 {strides = array<i32>} : memref<2x1xf32, #tpu.memory_space<vmem>>, vector<2x1xf32>,
    } else {
    }
    %c1_i32 = arith.constant 1 : i32
    %10 = arith.cmpi eq, %arg1, %c1_i32 : i32
    %11 = arith.extui %10 : i1 to i32
    %c0_i32_7 = arith.constant 0 : i32
    %12 = arith.cmpi ne, %11, %c0_i32_7 : i32
    scf.if %12 {
      %c0_11 = arith.constant 0 : index
      %c0_12 = arith.constant 0 : index
      %18 = vector.load %arg6[%c0_11, %c0_12] : memref<2x1xf32, #tpu.memory_space<vmem>>, vector<2x1xf32>
      %cst = arith.constant 1.000000e-07 : f32
      %19 = vector.broadcast %cst : f32 to vector<2x1xf32>
      %20 = arith.addf %18, %19 : vector<2x1xf32>
      %cst_13 = arith.constant 1.000000e+00 : f32
      %21 = vector.broadcast %cst_13 : f32 to vector<2x1xf32>
      %22 = arith.divf %21, %20 : vector<2x1xf32>
      %c0_14 = arith.constant 0 : index
      %c0_15 = arith.constant 0 : index
      %23 = vector.load %arg7[%c0_14, %c0_15] : memref<2x1xf32, #tpu.memory_space<vmem>>, vector<2x1xf32>
      %cst_16 = arith.constant 1.000000e-07 : f32
      %24 = vector.broadcast %cst_16 : f32 to vector<2x1xf32>
      %25 = arith.addf %23, %24 : vector<2x1xf32>
      %cst_17 = arith.constant 1.000000e+00 : f32
      %26 = vector.broadcast %cst_17 : f32 to vector<2x1xf32>
      %27 = arith.divf %26, %25 : vector<2x1xf32>
      %28 = vector.broadcast %22 : vector<2x1xf32> to vector<2x256xf32>
      %29 = arith.mulf %5, %28 : vector<2x256xf32>
      %30 = vector.broadcast %27 : vector<2x1xf32> to vector<2x256xf32>
      %31 = arith.mulf %6, %30 : vector<2x256xf32>
      %cst_18 = arith.constant 1.000000e-07 : f32
      %32 = vector.broadcast %cst_18 : f32 to vector<2x256xf32>
      %33 = arith.addf %29, %32 : vector<2x256xf32>
      %34 = arith.divf %31, %33 : vector<2x256xf32>
      %cst_19 = arith.constant 1.000000e-07 : f32
      %35 = vector.broadcast %cst_19 : f32 to vector<2x256xf32>
      %36 = arith.addf %34, %35 : vector<2x256xf32>
      %37 = math.log %36 : vector<2x256xf32>
      %38 = arith.mulf %31, %37 : vector<2x256xf32>
      %c0_20 = arith.constant 0 : index
      %c0_21 = arith.constant 0 : index
      %39 = vector.load %arg8[%c0_20, %c0_21] : memref<2x1xf32, #tpu.memory_space<vmem>>, vector<2x1xf32>
      %cst_22 = arith.constant dense<0.000000e+00> : vector<2xf32>
      %40 = vector.multi_reduction <add>, %38, %cst_22 [1] : vector<2x256xf32> to vector<2xf32>
      %41 = vector.shape_cast %40 : vector<2xf32> to vector<2x1xf32>
      %42 = arith.addf %39, %41 : vector<2x1xf32>
      %c0_23 = arith.constant 0 : index
      %c0_24 = arith.constant 0 : index
      %43 = vector.load %arg8[%c0_23, %c0_24] : memref<2x1xf32, #tpu.memory_space<vmem>>, vector<2x1xf32>
      tpu.vector_store %arg8[%c0_23, %c0_24], %42 {strides = array<i32>} : memref<2x1xf32, #tpu.memory_space<vmem>>, vector<2x1xf32>,
    } else {
    }
    %c1_i32_8 = arith.constant 1 : i32
    %13 = arith.cmpi eq, %arg1, %c1_i32_8 : i32
    %c0_i32_9 = arith.constant 0 : i32
    %14 = arith.cmpi eq, %arg2, %c0_i32_9 : i32
    %15 = arith.andi %13, %14 : i1
    %16 = arith.extui %15 : i1 to i32
    %c0_i32_10 = arith.constant 0 : i32
    %17 = arith.cmpi ne, %16, %c0_i32_10 : i32
    scf.if %17 {
      %c0_11 = arith.constant 0 : index
      %c0_12 = arith.constant 0 : index
      %18 = vector.load %arg8[%c0_11, %c0_12] : memref<2x1xf32, #tpu.memory_space<vmem>>, vector<2x1xf32>
      %c0_13 = arith.constant 0 : index
      %c0_14 = arith.constant 0 : index
      %19 = vector.load %arg5[%c0_13, %c0_14] : memref<2x1xf32, #tpu.memory_space<vmem>>, vector<2x1xf32>
      tpu.vector_store %arg5[%c0_13, %c0_14], %18 {strides = array<i32>} : memref<2x1xf32, #tpu.memory_space<vmem>>, vector<2x1xf32>,
    } else {
    }
    return
  }
  func.func @transform_0(%arg0: i32, %arg1: i32, %arg2: i32) -> (i32, i32) {
    %c0_i32 = arith.constant 0 : i32
    return %arg0, %arg2 : i32, i32
  }
  func.func @transform_1(%arg0: i32, %arg1: i32, %arg2: i32) -> (i32, i32) {
    %c0_i32 = arith.constant 0 : i32
    return %arg0, %arg2 : i32, i32
  }
  func.func @transform_2(%arg0: i32, %arg1: i32, %arg2: i32) -> (i32, i32) {
    %c0_i32 = arith.constant 0 : i32
    %c0_i32_0 = arith.constant 0 : i32
    return %arg0, %c0_i32 : i32, i32
  }
}

</mosaic_0001>

<bundles_post_ra>
// kernel: tpu_custom_call.1
= control target key start
LH: loop header
LB: loop body
LE: loop exit
PB: predicated region body
PF: predicated region fallthrough
CT: control target
= control target key end

     0   :  { %7 = vsyncpa [#allocation6], 0  ;;  %s667_s0 = inlined_call_operand.hbm [shape: f32[2,256], index: 0, kind: input, shape index: {}]   ;;  %s668_s1 = inlined_call_operand.hbm [shape: f32[2,256], index: 1, kind: input, shape index: {}]   ;;  %s669_s2 = inlined_call_operand.vmem [shape: f32[2,1], index: 2, kind: output, shape index: {}]  }
   0x1   :  { %8 = vsyncpa [#allocation8], 0  ;;  %s584_s9 = smov 0   ;;  %s586_s10 = smov 0  }
   0x2   :  { %s588_s11 = smov 0  }
   0x3 LB: > { %s403_s12 = sadd.s32 4294967295, %s560_s11   ;;  %s29_s13 = sadd.s32 1, %s556_s10  ;;  %s560_s11 = sphi %s588_s11, %s14_s11   ;;  %s556_s10 = sphi %s586_s10, %s679_s10   ;;  %s552_s9 = sphi %s584_s9, %s678_s9  }
   0x4   : > { %p31_p0 = scmp.ge.s32.totalorder %s29_s13, 2  ;;  %p404_p1 = scmp.ge.s32.totalorder %s560_s11, 1 }
   0x5   : > { %p120_p2 = scmp.lt.s32.totalorder %s560_s11, 3  ;;  %p609_p4 = scmp.eq.s32.totalorder %s403_s12, 0 }
   0x6   : > { %s681_s13 = smov (%p31_p0, %s29_s13), 0  ;;  %s562_s16 = smov [#allocation5]  }
   0x7   : > { %p605_p3 = pnand %p404_p1, %p120_p2  ;;  %s138_s17 = sshll.u32 %s562_s16, 4  ;;  %s139_s17 = int_to_ptr.vmem [resolvable:$true] %s138_s17 }
   0x8   : > { %s674_s15 = scalar_select %p609_p4, 1, 0 }
   0x9   : > { %s673_s14 = scalar_select %p605_p3, 1, 0 }
   0xa   : > { %p427_p5 = pneg %p605_p3  ;;  %s563_s18 = smov [#allocation7]  }
   0xb   : > { %s154_s19 = sshll.u32 %s563_s18, 4  ;;  %s489_s21 = scalar_lea.vmem %s139_s17, 64  ;;  %s155_s19 = int_to_ptr.vmem [resolvable:$true] %s154_s19 }
   0xc   : > { %p617_p6 = pnand %p609_p4, %p427_p5  ;;  %p490_p8 = scmp.ne.s32.totalorder %s139_s17, %s489_s21 }
   0xd   : > { %p497_p11 = scmp.lt.s32.totalorder %s139_s17, %s139_s17  ;;  %p498_p12 = scmp.lt.s32.totalorder %s489_s21, %s489_s21 }
   0xe   : > { %p480_p7 = pneg %p617_p6 }
   0xf   : > { %p499_p13 = por %p498_p12, %p497_p11 }
  0x10   : > { %p492_p9 = pnand %p490_p8, %p480_p7 }
  0x12   : > { %p493_p10 = pneg %p492_p9 }
  0x14   : > { %p500_p0 = pnand %p499_p13, %p493_p10 }
  0x16   : > { %503 = shalt.err (!%p500_p0)
}
  0x17   : > { %430 = dma.hbm_to_vmem [thread:$0]  (!%p617_p6), %s667_s0, 64, %s139_s17, [#allocation6]  }
  0x18   : > { %s515_s24 = scalar_lea.vmem %s155_s19, 64  ;;  %p523_p8 = scmp.lt.s32.totalorder %s155_s19, %s155_s19 }
  0x19   : > { %p516_p1 = scmp.ne.s32.totalorder %s155_s19, %s515_s24  ;;  %p524_p9 = scmp.lt.s32.totalorder %s515_s24, %s515_s24 }
  0x1b   : > { %p518_p2 = pnand %p516_p1, %p480_p7  ;;  %p525_p4 = por %p524_p9, %p523_p8 }
  0x1d   : > { %p519_p5 = pneg %p518_p2 }
  0x1f   : > { %p526_p3 = pnand %p525_p4, %p519_p5 }
  0x21   : > { %529 = shalt.err (!%p526_p3)
}
  0x22   : > { %433 = dma.hbm_to_vmem [thread:$0]  (!%p617_p6), %s668_s1, 64, %s155_s19, [#allocation8]  }
  0x23   : > { %p676_p10 = scmp.ne.s32.totalorder %s673_s14, 0 }
  0x24   : > { %p677_p11 = scmp.ne.s32.totalorder (!%p676_p10), %s674_s15, 0 }
  0x25   : > { %167 = sbr.rel (%p676_p10) target bundleno = 564 (0x234), region = 28 }
  0x2a   : > { %543 = dma.done.wait (%p677_p11), [#allocation6], 64  }
  0x2b   : > { %545 = vsyncadd (%p677_p11), [#allocation6], 4294967232 }
  0x2c   : > { %547 = dma.done.wait (%p677_p11), [#allocation8], 64  }
  0x2d   : > { %549 = vsyncadd (%p677_p11), [#allocation8], 4294967232  ;;  %p193_p3 = scmp.eq.s32.totalorder %s552_s9, 0 }
  0x2e   : > { %vm199_vm0 = vcmask (%p193_p3), 1024   ;;  %v564_v0 = vmov (%p193_p3), 0.0  }
  0x2f   : > { %198 = sbr.rel (!%p193_p3) target bundleno = 52 (0x34), region = 40  ;;  %200 = vst.msk [vmem:[#allocation2] sm:$0x3] (%p193_p3), %vm199_vm0, %v564_v0  ;;  %201 = vst.msk [vmem:[#allocation3] sm:$0x3] (%p193_p3), %vm199_vm0, %v564_v0 }
  0x30   : > { %202 = vst.msk [vmem:[#allocation4] sm:$0x3] (%p193_p3), %vm199_vm0, %v564_v0 }
  0x34 PF: > { %v203_v1 = vld [vmem:[#allocation5] sm:$0xf]  ;;  %v204_v2 = vld [vmem:[#allocation7] sm:$0xf]  ;;  %p411_p4 = scmp.ne.s32.totalorder %s552_s9, 0 }
  0x36   : > { %207 = sbr.rel (%p411_p4) target bundleno = 218 (0xda), region = 44 }
  0x3b   : > { %v213_v3 = vlaneseq  ;;  %v565_v4 = vmov 1983009808   ;;  %vm220_vm1 = vcmask 1041408   ;;  %v208_v19 = vld [vmem:[#allocation2] sm:$0x3]  ;;  %vm227_vm2 = vcmask 1024  }
  0x3c   : > { %v211_v5 = vunpack.c.l.s4 %v565_v4  ;;  %v229_v22 = vld [vmem:[#allocation3] sm:$0x3] }
  0x3d   : > { %v214_v6 = vshrl.u32 %v213_v3, 7 }
  0x3e   : > { %v212_v7 = vunpack.c.0.s8 %v211_v5 }
  0x40   : > { %v215_v8 = vsub.s32 %v212_v7, %v214_v6 }
  0x42   : > { %v216_v9 = vrot.slane %v203_v1, %v215_v8  ;;  %v237_v10 = vrot.slane %v204_v2, %v215_v8 }
  0x44   : > { %v217_v11 = vcombine.high %v216_v9, %v216_v9  ;;  %v221_v12 = vsel %vm220_vm1, %v216_v9, 0.0  ;;  %v238_v13 = vcombine.high %v237_v10, %v237_v10  ;;  %v241_v15 = vsel %vm220_vm1, %v237_v10, 0.0 }
  0x46   : > { %v222_v14 = vsel %vm220_vm1, %v217_v11, 0.0  ;;  %v242_v16 = vsel %vm220_vm1, %v238_v13, 0.0 }
  0x47   : > { %v223_v17 = vadd.f32 %v222_v14, %v221_v12  ;;  %v243_v18 = vadd.f32 %v242_v16, %v241_v15 }
  0x49   : > { %224 = vadd.xlane.f32.xlu0 %v223_v17 }
  0x4d   : > { %244 = vadd.xlane.f32.xlu0 %v243_v18 }
  0xd2   : > { %v225_v20 = vpop.xlane.xlu0 %224 }
  0xd3   : > { %v226_v21 = vadd.f32 %v225_v20, %v208_v19 }
  0xd5   : > { %228 = vst.msk [vmem:[#allocation2] sm:$0x3] %vm227_vm2, %v226_v21 }
  0xd6   : > { %v245_v23 = vpop.xlane.xlu0 %244 }
  0xd7   : > { %v246_v24 = vadd.f32 %v245_v23, %v229_v22 }
  0xd9   : > { %247 = vst.msk [vmem:[#allocation3] sm:$0x3] %vm227_vm2, %v246_v24 }
  0xda PF: > { %p248_p6 = scmp.eq.s32.totalorder %s552_s9, 1  ;;  %p412_p7 = scmp.ne.s32.totalorder %s552_s9, 1 }
  0xdc   : > { %251 = sbr.rel (%p412_p7) target bundleno = 556 (0x22c), region = 48 }
  0xe1   : > { %v252_v25 = vld [vmem:[#allocation2] sm:$0x3]  ;;  %v256_v26 = vld [vmem:[#allocation3] sm:$0x3]  ;;  %v566_v27 = vmov 0   ;;  %v267_v34 = vlaneseq  ;;  %vm305_vm3 = vcmask 1041408  }
  0xe2   : > { %469 = vset.pattern.permute.xlu0 %v566_v27  ;;  %v253_v28 = vadd.f32 1e-07, %v252_v25  ;;  %v257_v29 = vadd.f32 1e-07, %v256_v26  ;;  %v567_v32 = vmov 269488144  }
  0xe3   : > { %v265_v33 = vunpack.c.l.s4 %v567_v32  ;;  %v268_v36 = vshrl.u32 %v267_v34, 7  ;;  %v568_v48 = vmov 1983009808   ;;  %v293_v60 = vld [vmem:[#allocation4] sm:$0x3]  ;;  %vm312_vm4 = vcmask 1024  }
  0xe4   : > { %470 = vrcp.f32 %v253_v28  ;;  %v296_v49 = vunpack.c.l.s4 %v568_v48 }
  0xe5   : > { %472 = vrcp.f32 %v257_v29  ;;  %v266_v35 = vunpack.c.0.s8 %v265_v33 }
  0xe6   : > { %v297_v50 = vunpack.c.0.s8 %v296_v49 }
  0xe7   : > { %v269_v37 = vsub.s32 %v266_v35, %v268_v36 }
  0xe8   : > { %v300_v53 = vsub.s32 %v297_v50, %v268_v36 }
  0xf1   : > { %v471_v30 = vpop.eup %470 }
  0xf2   : > { %262 = vperm.xlu0 %469, %v471_v30   ;;  %v473_v31 = vpop.eup %472 }
  0xf6   : > { %275 = vperm.xlu0 %469, %v473_v31  }
 0x16d   : > { %v263_v38 = vpop.permute.xlu0 %262 }
 0x16e   : > { %v270_v39 = vrot.slane %v263_v38, %v269_v37 }
 0x170   : > { %v272_v40 = vmul.f32 %v270_v39, %v203_v1 }
 0x171   : > { %v276_v42 = vpop.permute.xlu0 %275 }
 0x172   : > { %v286_v41 = vadd.f32 1e-07, %v272_v40  ;;  %v283_v43 = vrot.slane %v276_v42, %v269_v37 }
 0x174   : > { %474 = vrcp.f32 %v286_v41  ;;  %v285_v44 = vmul.f32 %v283_v43, %v204_v2 }
 0x181   : > { %v475_v45 = vpop.eup %474 }
 0x182   : > { %v288_v46 = vmul.f32 %v475_v45, %v285_v44 }
 0x184   : > { %v289_v47 = vadd.f32 1e-07, %v288_v46 }
 0x186   : > { %476 = vlog2.f32 %v289_v47 }
 0x193   : > { %v477_v51 = vpop.eup %476 }
 0x194   : > { %v291_v52 = vmul.f32 0.6931472, %v477_v51 }
 0x196   : > { %v292_v54 = vmul.f32 %v291_v52, %v285_v44 }
 0x198   : > { %v301_v55 = vrot.slane %v292_v54, %v300_v53 }
 0x19a   : > { %v302_v56 = vcombine.high %v301_v55, %v301_v55  ;;  %v306_v57 = vsel %vm305_vm3, %v301_v55, 0.0 }
 0x19c   : > { %v307_v58 = vsel %vm305_vm3, %v302_v56, 0.0 }
 0x19d   : > { %v308_v59 = vadd.f32 %v307_v58, %v306_v57 }
 0x19f   : > { %309 = vadd.xlane.f32.xlu1 %v308_v59 }
 0x228   : > { %v310_v61 = vpop.xlane.xlu1 %309 }
 0x229   : > { %v311_v62 = vadd.f32 %v310_v61, %v293_v60 }
 0x22b   : > { %313 = vst.msk [vmem:[#allocation4] sm:$0x3] %vm312_vm4, %v311_v62 }
 0x22c PF: > { %317 = sbr.rel (!%p248_p6) target bundleno = 564 (0x234), region = 52  ;;  %vm319_vm5 = vcmask (%p248_p6), 1024  }
 0x232   : > { %v318_v63 = vld [vmem:[#allocation4] sm:$0x3] }
 0x233   : > { %320 = vst.msk [vmem:[%s669_s2] sm:$0x3] %vm319_vm5, %v318_v63 }
 0x234 PF: > { %s14_s11 = sadd.s32 1, %s560_s11   ;;  %s678_s9 = smov %s556_s10 }
 0x235   : > { %p11_p12 = scmp.ge.s32.totalorder %s14_s11, 4   ;;  %s679_s10 = smov %s681_s13 }
 0x237   :  { %13 = sbr.rel (!%p11_p12) target bundleno = 3 (0x3), region = 82 }
 0x23c   :  { %340 = vsyncpa [#allocation6], 1 }
 0x23d   :  { %342 = vsyncpa [#allocation6 + $0x1], 1 }
 0x23e   :  { %343 = vsyncpa [#allocation8], 1 }

</bundles_post_ra>
